<compile_context>
chip_gen: v6e
topology: v6e:2x2x1
jax: 0.10.0
libtpu: 0.0.40
codegen_flags: <defaults>
</compile_context>

<pallas_src>
import functools

import numpy as np
import jax
import jax.numpy as jnp
from jax import lax
from jax.experimental import pallas as pl
from jax.experimental.pallas import tpu as pltpu

# ----------------------------------------------------------------------------
# Canvas geometry: every layer's activation lives on an (HC, WC) spatial canvas,
# flattened row-major to M lanes.  Deepest read of any valid output is row 18 /
# flat 18*WC+18, so HC=20 (M = 640 = 5*128) is sufficient.
# ----------------------------------------------------------------------------
HC, WC = 20, 32
M = HC * WC  # 640


def _ceil_log2(n: int) -> int:
    return max(0, (n - 1).bit_length())


# ----------------------------------------------------------------------------
# One-off probe: pin down pltpu.roll's shift direction on this backend.
# ----------------------------------------------------------------------------
@functools.cache
def _roll_sign() -> int:
    """+1 if pltpu.roll(x, k, axis) == jnp.roll(x, k, axis), else -1."""
    x = jnp.tile(jnp.arange(256, dtype=jnp.float32)[None, :], (8, 1))

    def probe(x_ref, o_ref):
        o_ref[...] = pltpu.roll(x_ref[...], 1, 1)

    y = pl.pallas_call(probe, out_shape=jax.ShapeDtypeStruct((8, 256), jnp.float32))(x)
    y = np.asarray(jax.block_until_ready(y))
    xn = np.asarray(x)
    if np.array_equal(y, np.roll(xn, 1, axis=1)):
        return 1
    if np.array_equal(y, np.roll(xn, -1, axis=1)):
        return -1
    raise RuntimeError("unexpected pltpu.roll semantics")


# ----------------------------------------------------------------------------
# Fused kernel.  `nb` batch elements are folded side-by-side on the lane axis
# (each gets its own M-lane canvas; valid reads never cross an element boundary).
# ----------------------------------------------------------------------------
def _make_kernel(roll_sign: int, nb: int):
    NBM = nb * M

    def fetch(x, s):
        """y[:, f] = x[:, (f + s) % NBM]  (read from higher flat index)."""
        s = s % NBM
        if s == 0:
            return x
        return pltpu.roll(x, (-roll_sign * s) % NBM, 1)

    def scatter(x, s):
        """y[:, f] = x[:, (f - s) % NBM]  (move data to higher flat index)."""
        s = s % NBM
        if s == 0:
            return x
        return pltpu.roll(x, (roll_sign * s) % NBM, 1)

    def tree_sum(terms):
        terms = list(terms)
        while len(terms) > 1:
            nxt = [terms[i] + terms[i + 1] for i in range(0, len(terms) - 1, 2)]
            if len(terms) % 2:
                nxt.append(terms[-1])
            terms = nxt
        return terms[0]

    def kernel(x_ref, w1, b1, w2, b2, w3, b3, wt1, bt1, wt2, bt2, wt3, bt3, o_ref):
        # Per-element flat index -> (h, w) helpers, computed once.
        lane = lax.broadcasted_iota(jnp.int32, (1, NBM), 1)
        local = lane
        for _ in range(nb - 1):                 # local = lane mod M without int-div
            local = jnp.where(local >= M, local - M, local)
        h_idx = local // WC
        w_idx = local % WC
        chunk16 = local // 16                   # 16-lane chunk index (final flatten)

        relu = lambda v: jnp.maximum(v, 0.0)
        softsign = lambda v: v / (1.0 + jnp.abs(v))

        def block_mask(hv, wv):
            return (h_idx < hv) & (w_idx < wv)

        # -------- conv: kw column-shifted copies stacked into the matmul K dim,
        #          one MXU matmul per kernel row, roll-commuted row partials. ----
        def conv(canvas, w_ref, b_ref, kh, kw, act):
            xb = canvas.astype(jnp.bfloat16)
            cols = [xb] + [fetch(xb, j) for j in range(1, kw)]
            xstack = jnp.concatenate(cols, axis=0)            # (C_in*kw, NBM)
            parts = []
            for i in range(kh):
                p = jnp.dot(w_ref[i], xstack, preferred_element_type=jnp.float32)
                parts.append(p if i == 0 else fetch(p, i * WC))
            return act(tree_sum(parts) + b_ref[...])

        # -------- conv1 (C_in = 1): roll the raw (1, NBM) row, broadcast-MAC. ----
        def conv_c1(row, w_ref, b_ref, act):
            terms = []
            for i in range(3):
                for j in range(3):
                    t = i * 3 + j
                    src = row if t == 0 else fetch(row, i * WC + j)
                    terms.append(w_ref[t] * src)              # (16,1)*(1,NBM)
            return act(tree_sum(terms) + b_ref[...])

        # -------- log-depth stride-2 compaction / expansion along one axis. ------
        # compact: element at index 2q (units of `stride` lanes along `idx`) -> q.
        def compact_axis(x, idx, stride, n):
            cur = x
            for k in range(_ceil_log2(n)):
                period, lo, step = 1 << (k + 2), 1 << (k + 1), 1 << k
                r = idx % period
                mask = (r >= lo) & (r < lo + step)
                cur = jnp.where(mask, 0.0, cur) + fetch(jnp.where(mask, cur, 0.0),
                                                        step * stride)
            return cur

        # expand: element at index q -> 2q (inverse of compact, steps reversed).
        def expand_axis(x, idx, stride, n):
            cur = x
            for k in reversed(range(_ceil_log2(n))):
                period, lo, step = 1 << (k + 2), 1 << k, 1 << k
                r = idx % period
                mask = (r >= lo) & (r < lo + step)
                cur = jnp.where(mask, 0.0, cur) + scatter(jnp.where(mask, cur, 0.0),
                                                          step * stride)
            return cur

        def maxpool(x, hn, wn):
            """2x2/stride-2 max pool (floor mode): 2 rolls + log-depth compaction."""
            m = jnp.maximum(x, fetch(x, WC))       # vertical pair max
            m = jnp.maximum(m, fetch(m, 1))        # horizontal pair max
            keep = block_mask(2 * hn, 2 * wn) & (h_idx % 2 == 0) & (w_idx % 2 == 0)
            m = jnp.where(keep, m, 0.0)
            m = compact_axis(m, w_idx, 1, wn)
            return compact_axis(m, h_idx, WC, hn)

        def recanvas(x, hv, wv, pad):
            """Keep the valid (hv, wv) block, place it at (pad, pad), zero elsewhere."""
            return scatter(jnp.where(block_mask(hv, wv), x, 0.0), pad * WC + pad)

        def dilate2(x, hn, wn, pad):
            """Stride-2 deconv input: x[y, x] -> [pad + 2y, pad + 2x], zero elsewhere."""
            xm = jnp.where(block_mask(hn, wn), x, 0.0)
            xm = expand_axis(xm, w_idx, 1, wn)
            xm = expand_axis(xm, h_idx, WC, hn)
            return scatter(xm, pad * WC + pad)

        def flatten16(x):
            """Flatten the 16x16 block (row stride WC) into 256 contiguous lanes
            per element: 16-lane-chunk compaction in 4 masked rolls."""
            xm = jnp.where(block_mask(16, 16), x, 0.0)
            return compact_axis(xm, chunk16, 16, 16)

        # ---------------- encoder ----------------
        x0 = x_ref[0]                                                  # (1, NBM)
        a1 = conv_c1(x0, w1, b1, relu)                                 # 16ch, 14x14
        p1 = maxpool(a1, 7, 7)                                         # 16ch,  7x7
        a2 = conv(p1, w2, b2, 3, 3, relu)                              # 32ch,  5x5
        a3 = conv(recanvas(a2, 5, 5, 1), w3, b3, 3, 3, relu)           # 64ch,  5x5
        p2 = maxpool(a3, 2, 2)                                         # 64ch,  2x2
        # ---------------- decoder (transposed convs as flipped-kernel convs) ----
        a4 = conv(dilate2(p2, 2, 2, 3), wt1, bt1, 5, 5, softsign)      # 32ch,  5x5
        a5 = conv(dilate2(a4, 5, 5, 5), wt2, bt2, 7, 7, softsign)      # 16ch, 13x13
        a6 = conv(recanvas(a5, 13, 13, 3), wt3, bt3, 4, 4, softsign)   #  8ch, 16x16

        flat = flatten16(a6)                                           # (8, NBM)
        for e in range(nb):
            xg = flat[:, e * M:e * M + 256]                            # (8, 256)
            g = lax.dot_general(xg, xg, (((0,), (0,)), ((), ())),
                                preferred_element_type=jnp.float32)
            o_ref[0, e] = pl.reciprocal(1.0 + jnp.exp(-g), approx=True)

    return kernel


# ----------------------------------------------------------------------------
# Host-side weight packing and the pallas_call wrapper
# ----------------------------------------------------------------------------
def _pack_conv_rows(w):
    """(O, C, kh, kw) -> (kh, O, kw*C); row i's taps stacked j-major, c-minor."""
    O, C, kh, kw = w.shape
    return jnp.transpose(w, (2, 0, 3, 1)).reshape(kh, O, kw * C)


def _pack_deconv_rows(w):
    """torch ConvTranspose2d weight (C_in, O, kh, kw) -> equivalent conv, row-stacked."""
    w_eq = jnp.flip(w, axis=(2, 3)).transpose(1, 0, 2, 3)  # (O, C_in, kh, kw)
    return _pack_conv_rows(w_eq)


def _pack_conv_taps(w):
    """(O, C, kh, kw) -> (kh*kw, O, C); tap t = i*kw + j (used by the C_in=1 conv)."""
    O, C, kh, kw = w.shape
    return jnp.transpose(w, (2, 3, 0, 1)).reshape(kh * kw, O, C)


def pack_params(p):
    f32, bf16 = jnp.float32, jnp.bfloat16
    col = lambda b: b.reshape(-1, 1).astype(f32)
    return (
        _pack_conv_taps(p["w1"]).astype(f32), col(p["b1"]),      # conv1: VPU, f32
        _pack_conv_rows(p["w2"]).astype(bf16), col(p["b2"]),
        _pack_conv_rows(p["w3"]).astype(bf16), col(p["b3"]),
        _pack_deconv_rows(p["wt1"]).astype(bf16), col(p["bt1"]),
        _pack_deconv_rows(p["wt2"]).astype(bf16), col(p["bt2"]),
        _pack_deconv_rows(p["wt3"]).astype(bf16), col(p["bt3"]),
    )


def make_forward(batch_fold=None):
    roll_sign = _roll_sign()

    def forward(x, packed):
        B = x.shape[0]
        assert x.shape[1:] == (1, 16, 16), x.shape
        # Lane-fold 2 elements per grid step only when >= 2 grid steps remain,
        # so a megacore chip (v7x) never idles a TensorCore on small batches.
        nb = batch_fold
        if nb is None:
            nb = 2 if (B >= 4 and B % 2 == 0) else 1
        assert B % nb == 0
        G = B // nb
        kernel = _make_kernel(roll_sign, nb)

        x_can = jnp.pad(x.astype(jnp.float32),
                        ((0, 0), (0, 0), (0, HC - x.shape[2]), (0, WC - x.shape[3])))
        x_can = x_can.reshape(B, 1, M)
        x_can = x_can.reshape(G, nb, 1, M).transpose(0, 2, 1, 3).reshape(G, 1, nb * M)

        def full_spec(a):
            nd = a.ndim
            return pl.BlockSpec(a.shape, lambda g, nd=nd: (0,) * nd)

        in_specs = [pl.BlockSpec((1, 1, nb * M), lambda g: (g, 0, 0))]
        in_specs += [full_spec(a) for a in packed]

        out = pl.pallas_call(
            kernel,
            out_shape=jax.ShapeDtypeStruct((G, nb, 256, 256), jnp.float32),
            grid=(G,),
            in_specs=in_specs,
            out_specs=pl.BlockSpec((1, nb, 256, 256), lambda g: (g, 0, 0, 0)),
            compiler_params=pltpu.CompilerParams(
                dimension_semantics=("parallel",)),
        )(x_can, *packed)
        return out.reshape(B, 256, 256)

    return jax.jit(forward)


# ----------------------------------------------------------------------------
# Pure-JAX reference (precision-matched: bf16 matmul operands, f32 accumulate;
# conv1 stays f32 like the kernel's VPU path)
# ----------------------------------------------------------------------------
def _ref_im2col(x, kh, kw, stride, pad):
    B, C, H, W = x.shape
    if pad > 0:
        x = jnp.pad(x, ((0, 0), (0, 0), (pad, pad), (pad, pad)))
    Hp, Wp = H + 2 * pad, W + 2 * pad
    OH = (Hp - kh) // stride + 1
    OW = (Wp - kw) // stride + 1
    cols = []
    for i in range(kh):
        for j in range(kw):
            cols.append(x[:, :, i:i + stride * (OH - 1) + 1:stride,
                             j:j + stride * (OW - 1) + 1:stride])
    p = jnp.stack(cols, axis=0).reshape(kh, kw, B, C, OH, OW)
    p = p.transpose(2, 4, 5, 3, 0, 1)
    return p.reshape(B * OH * OW, C * kh * kw), OH, OW


def _ref_conv2d(x, w, b, stride, pad, act, bf16_matmul):
    O, C, kh, kw = w.shape
    B = x.shape[0]
    patches, OH, OW = _ref_im2col(x, kh, kw, stride, pad)
    wmat = w.reshape(O, C * kh * kw).T
    if bf16_matmul:
        patches = patches.astype(jnp.bfloat16)
        wmat = wmat.astype(jnp.bfloat16)
        out = jnp.dot(patches, wmat, preferred_element_type=jnp.float32)
    else:
        out = jnp.dot(patches, wmat, preferred_element_type=jnp.float32,
                      precision=lax.Precision.HIGHEST)
    out = act(out + b[None, :].astype(jnp.float32))
    return out.reshape(B, OH, OW, O).transpose(0, 3, 1, 2)


def _ref_deconv2d(x, w, b, stride, pad, act, bf16_matmul):
    C, O, kh, kw = w.shape
    B, _, H, W = x.shape
    if stride > 1:
        Hd, Wd = (H - 1) * stride + 1, (W - 1) * stride + 1
        xd = jnp.zeros((B, C, Hd, Wd), x.dtype).at[:, :, ::stride, ::stride].set(x)
    else:
        xd = x
    w_eq = jnp.flip(w, axis=(2, 3)).transpose(1, 0, 2, 3)
    return _ref_conv2d(xd, w_eq, b, 1, kh - 1 - pad, act, bf16_matmul)


def _ref_maxpool(x):
    B, C, H, W = x.shape
    OH, OW = H // 2, W // 2
    xc = x[:, :, :OH * 2, :OW * 2]
    return jnp.maximum(jnp.maximum(xc[:, :, 0::2, 0::2], xc[:, :, 0::2, 1::2]),
                       jnp.maximum(xc[:, :, 1::2, 0::2], xc[:, :, 1::2, 1::2]))


def reference_forward(x, p):
    relu = lambda v: jnp.maximum(v, 0.0)
    softsign = lambda v: v / (1.0 + jnp.abs(v))
    h = _ref_conv2d(x, p["w1"], p["b1"], 1, 0, relu, False)
    h = _ref_maxpool(h)
    h = _ref_conv2d(h, p["w2"], p["b2"], 1, 0, relu, True)
    h = _ref_conv2d(h, p["w3"], p["b3"], 1, 1, relu, True)
    h = _ref_maxpool(h)
    h = _ref_deconv2d(h, p["wt1"], p["bt1"], 2, 1, softsign, True)
    h = _ref_deconv2d(h, p["wt2"], p["bt2"], 2, 1, softsign, True)
    h = _ref_deconv2d(h, p["wt3"], p["bt3"], 1, 0, softsign, True)
    B, C, H, W = h.shape
    h = h.reshape(B, C, H * W)
    g = jnp.einsum("bij,bik->bjk", h, h, precision=lax.Precision.HIGHEST)
    return 1.0 / (1.0 + jnp.exp(-g))


# ----------------------------------------------------------------------------
# Test harness
# ----------------------------------------------------------------------------
def init_params(key):
    def w_init(k, shape):
        fan_in = int(np.prod(shape[1:]))
        return jax.random.normal(k, shape, jnp.float32) / np.sqrt(fan_in)

    ks = jax.random.split(key, 6)
    return {
        "w1": w_init(ks[0], (16, 1, 3, 3)),   "b1": 0.01 * jnp.ones((16,), jnp.float32),
        "w2": w_init(ks[1], (32, 16, 3, 3)),  "b2": 0.01 * jnp.ones((32,), jnp.float32),
        "w3": w_init(ks[2], (64, 32, 3, 3)),  "b3": 0.01 * jnp.ones((64,), jnp.float32),
        "wt1": w_init(ks[3], (64, 32, 5, 5)), "bt1": 0.01 * jnp.ones((32,), jnp.float32),
        "wt2": w_init(ks[4], (32, 16, 7, 7)), "bt2": 0.01 * jnp.ones((16,), jnp.float32),
        "wt3": w_init(ks[5], (16, 8, 4, 4)),  "bt3": 0.01 * jnp.ones((8,), jnp.float32),
    }


if __name__ == "__main__":
    key = jax.random.PRNGKey(0)
    kx, kp = jax.random.split(key)
    params = init_params(kp)
    packed = pack_params(params)
    forward = make_forward()
    ref_fn = jax.jit(reference_forward)

    # Primary check: B=2 (one element per grid step; keeps both v7x cores busy).
    x = jax.random.normal(kx, (2, 1, 16, 16), jnp.float32)
    out = jax.block_until_ready(forward(x, packed))
    assert out.shape == (2, 256, 256), out.shape
    assert bool(jnp.all(jnp.isfinite(out)))
    assert bool(jnp.all((out >= 0.0) & (out <= 1.0 + 1e-3)))
    ref = jax.block_until_ready(ref_fn(x, params))
    max_err = float(jnp.max(jnp.abs(out - ref)))
    assert max_err < 5e-2, f"B=2 mismatch vs reference: max abs err {max_err}"

    # Secondary check: B=4 exercises the 2-elements-per-grid-step lane fold
    # (grid stays 2, so megacore chips remain fully occupied).
    x4 = jax.random.normal(jax.random.PRNGKey(1), (4, 1, 16, 16), jnp.float32)
    out4 = jax.block_until_ready(forward(x4, packed))
    ref4 = jax.block_until_ready(ref_fn(x4, params))
    max_err4 = float(jnp.max(jnp.abs(out4 - ref4)))
    assert max_err4 < 5e-2, f"B=4 mismatch vs reference: max abs err {max_err4}"

    print("KERNEL_OK")
</pallas_src>

<mosaic_0001>
module attributes {stable_mosaic.version = 11 : i64} {
  func.func @probe(%arg0: memref<8x256xf32, #tpu.memory_space<vmem>>, %arg1: memref<8x256xf32, #tpu.memory_space<vmem>>) attributes {dimension_semantics = [], scalar_prefetch = 0 : i64, scratch_operands = 0 : i64, tpu.core_type = #tpu.core_type<tc>} {
    %c0 = arith.constant 0 : index
    %c0_0 = arith.constant 0 : index
    %0 = vector.load %arg0[%c0, %c0_0] : memref<8x256xf32, #tpu.memory_space<vmem>>, vector<8x256xf32>
    %c1_i32 = arith.constant 1 : i32
    %1 = tpu.dynamic_rotate %0 by %c1_i32 dim 1 : vector<8x256xf32>, i32 -> vector<8x256xf32>
    %c0_1 = arith.constant 0 : index
    %c0_2 = arith.constant 0 : index
    %2 = vector.load %arg1[%c0_1, %c0_2] : memref<8x256xf32, #tpu.memory_space<vmem>>, vector<8x256xf32>
    tpu.vector_store %arg1[%c0_1, %c0_2], %1 {strides = array<i32>} : memref<8x256xf32, #tpu.memory_space<vmem>>, vector<8x256xf32>,
    return
  }
}

</mosaic_0001>

<bundles_post_ra>
// kernel: tpu_custom_call.1
= control target key start
LH: loop header
LB: loop body
LE: loop exit
PB: predicated region body
PF: predicated region fallthrough
CT: control target
= control target key end

     0   :  { %6 = vsyncpa [#allocation3], 0  ;;  %s115_s0 = inlined_call_operand.hbm [shape: f32[8,256], index: 0, kind: input, shape index: {}]   ;;  %s116_s1 = inlined_call_operand.hbm [shape: f32[8,256], index: 1, kind: output, shape index: {}]  }
   0x1   :  { %7 = vsyncpa [#allocation4], 0  ;;  %s96_s6 = smov [#allocation2]  }
   0x2   :  { %s14_s7 = sshll.u32 %s96_s6, 4  ;;  %s15_s7 = int_to_ptr.vmem [resolvable:$true] %s14_s7 }
   0x3   :  { %s60_s8 = scalar_lea.vmem %s15_s7, 256  ;;  %p65_p1 = scmp.lt.s32.totalorder %s15_s7, %s15_s7 }
   0x4   :  { %p61_p0 = scmp.ne.s32.totalorder %s15_s7, %s60_s8  ;;  %p66_p2 = scmp.lt.s32.totalorder %s60_s8, %s60_s8 }
   0x6   :  { %p67_p3 = por %p66_p2, %p65_p1 }
   0x8   :  { %p68_p4 = pnand %p67_p3, %p61_p0 }
   0xa   :  { %71 = shalt.err (!%p68_p4)
}
   0xb   :  { %17 = dma.hbm_to_vmem [thread:$0]  %s115_s0, 256, %s15_s7, [#allocation3]  }
   0xc   :  { %92 = dma.done.wait [#allocation3], 256  }
   0xd   :  { %93 = vsyncadd [#allocation3], 4294967040  ;;  %v21_v0 = vld [vmem:[#allocation2] sm:$0xff]  ;;  %s97_s11 = smov 1   ;;  %v22_v1 = vld [vmem:[#allocation2 + $0x8] sm:$0xff]  ;;  %v27_v2 = vlaneseq  ;;  %s98_s12 = smov [#allocation5]  }
   0xe   :  { %23 = vrot.lane.b32.xlu0 %v21_v0, %s97_s11  ;;  %s40_s13 = sshll.u32 %s98_s12, 4  ;;  %s41_s13 = int_to_ptr.vmem [resolvable:$true] %s40_s13 }
   0xf   :  { %v28_v3 = vand.u32 127, %v27_v2  ;;  %s72_s0 = scalar_lea.vmem %s41_s13, 256  ;;  %p77_p6 = scmp.lt.s32.totalorder %s41_s13, %s41_s13 }
  0x10   :  { %p73_p5 = scmp.ne.s32.totalorder %s41_s13, %s72_s0  ;;  %p78_p7 = scmp.lt.s32.totalorder %s72_s0, %s72_s0 }
  0x11   :  { %vm29_vm0 = vcmp.lt.s32.totalorder %v28_v3, 1 }
  0x12   :  { %25 = vrot.lane.b32.xlu0 %v22_v1, %s97_s11  ;;  %p79_p8 = por %p78_p7, %p77_p6 }
  0x14   :  { %p80_p9 = pnand %p79_p8, %p73_p5 }
  0x80   :  { %v24_v4 = vpop.permute.xlu0 %23 }
  0x84   :  { %v26_v5 = vpop.permute.xlu0 %25 }
  0x85   :  { %v30_v6 = vsel %vm29_vm0, %v24_v4, %v26_v5  ;;  %v31_v7 = vsel %vm29_vm0, %v26_v5, %v24_v4 }
  0x86   :  { %32 = vst [vmem:[#allocation5] sm:$0xff] %v31_v7  ;;  %33 = vst [vmem:[#allocation5 + $0x8] sm:$0xff] %v30_v6 }
  0x87   :  { %83 = shalt.err (!%p80_p9)
}
  0x88   :  { %43 = dma.vmem_to_hbm [thread:$0]  %s41_s13, 256, %s116_s1, [#allocation4]  }
  0x89   :  { %94 = dma.done.wait [#allocation4], 256  }
  0x8a   :  { %95 = vsyncadd [#allocation4], 4294967040 }
  0x8b   :  { %47 = vsyncpa [#allocation3], 1 }
  0x8c   :  { %48 = vsyncpa [#allocation4], 1 }

</bundles_post_ra>
